<compile_context>
chip_gen: v5e
topology: v5e:2x2
jax: 0.10.0
libtpu: 0.0.40
codegen_flags: <defaults>
</compile_context>

<pallas_src>
import jax
import jax.numpy as jnp
from jax import lax
from jax.experimental import pallas as pl
from jax.experimental.pallas import tpu as pltpu

BN_EPS = 1e-5


def _down_conv_kernel(x_ref, w1_ref, g1_ref, bt1_ref, w2_ref, g2_ref, bt2_ref,
                      fold_ref, bcast_ref, o_ref, buf1_ref, buf2_ref):
    # x_ref    : (2, 2, N, Hp, Wp*Cin) bf16   pooling taps on leading axes
    # w1_ref   : (3, Wp*Cin,  Wp*Cout) bf16   clipped banded conv1 weights
    # w2_ref   : (3, Wp*Cout, Wp*Cout) bf16   clipped banded conv2 weights
    # g*/bt*   : (1, Cout) f32                BN gamma / beta
    # fold_ref : (Wp*Cout, Cout) f32          0/1 width-fold matrix
    # bcast_ref: (Cout, Wp*Cout) f32          0/1 width-broadcast matrix
    # o_ref    : (N*Hp, Wp*Cout) f32          lane-dense output
    # buf*_ref : (N, Hp+16, Wp*C) f32         row-padded activation scratch
    N, Hp = x_ref.shape[2], x_ref.shape[3]
    R, WCout = o_ref.shape
    Cout = g1_ref.shape[1]
    Wp = WCout // Cout
    inv_cnt = 1.0 / float(N * Hp * Wp)

    # ---- MaxPool 2x2 stride 2: elementwise max of the four dense taps ----
    pooled = jnp.maximum(jnp.maximum(x_ref[0, 0], x_ref[0, 1]),
                         jnp.maximum(x_ref[1, 0], x_ref[1, 1]))  # (N,Hp,Wp*Cin)

    def conv_bn_relu(buf_ref, act_f32, w_ref, g_ref, bt_ref):
        # act_f32: (N, Hp, L) f32 un-padded activation, L = Wp * C.
        L = buf_ref.shape[2]

        # Row padding: zeros in their own aligned 8-row tiles; the interior
        # store starts at sublane offset 8 (tile-aligned, full lane width).
        zt = jnp.zeros((N, 8, L), jnp.float32)
        buf_ref[:, 0:8, :] = zt
        buf_ref[:, Hp + 8:Hp + 16, :] = zt
        buf_ref[:, 8:Hp + 8, :] = act_f32

        # 3x3 "same" conv == 3 banded MXU matmuls (one per kernel row); the
        # kx taps, width placement and channel contraction are one contraction.
        acc = jnp.zeros((R, WCout), jnp.float32)
        for ky in range(3):
            rows = buf_ref[:, ky + 7:ky + 7 + Hp, :].reshape(R, L)
            acc = acc + jnp.dot(rows.astype(jnp.bfloat16), w_ref[ky],
                                preferred_element_type=jnp.float32)

        # ---- BatchNorm (batch stats, E[x^2]-E[x]^2) + ReLU, lane-dense ----
        s1 = jnp.sum(acc, axis=0, keepdims=True)             # (1, Wp*Cout)
        s2 = jnp.sum(acc * acc, axis=0, keepdims=True)        # (1, Wp*Cout)
        mean = jnp.dot(s1, fold_ref[...],
                       preferred_element_type=jnp.float32) * inv_cnt  # (1, Cout)
        ex2 = jnp.dot(s2, fold_ref[...],
                      preferred_element_type=jnp.float32) * inv_cnt
        var = jnp.maximum(ex2 - mean * mean, 0.0)              # clamp cancellation
        scale = g_ref[...] * lax.rsqrt(var + BN_EPS)           # (1, Cout)
        shift = bt_ref[...] - mean * scale
        scale_f = jnp.dot(scale, bcast_ref[...],
                          preferred_element_type=jnp.float32)  # (1, Wp*Cout)
        shift_f = jnp.dot(shift, bcast_ref[...],
                          preferred_element_type=jnp.float32)
        return jnp.maximum(acc * scale_f + shift_f, 0.0)       # (R, Wp*Cout)

    y1 = conv_bn_relu(buf1_ref, pooled.astype(jnp.float32),
                      w1_ref, g1_ref, bt1_ref)
    y2 = conv_bn_relu(buf2_ref, y1.reshape(N, Hp, WCout),
                      w2_ref, g2_ref, bt2_ref)
    o_ref[...] = y2


def _band_weights(w_hwio, Wp):
    """(3, 3, Cin, Cout) HWIO -> (3, Wp*Cin, Wp*Cout) clipped banded matrices.

    band[ky][wp*Cin + ci, w*Cout + co] = w[ky, wp - w + 1, ci, co] when
    wp - w + 1 in {0,1,2}, else 0.  Out-of-range input columns simply have no
    band entries, which implements the "SAME" width zero-padding without any
    padded activation columns.
    """
    kh, kw, Cin, Cout = w_hwio.shape
    kx = jnp.arange(kw)[:, None, None]
    wp = jnp.arange(Wp)[None, :, None]
    w = jnp.arange(Wp)[None, None, :]
    sel = (wp == w + kx - 1).astype(w_hwio.dtype)          # (kw, Wp, Wp)
    wb = jnp.einsum('ykio,kpw->ypiwo', w_hwio, sel)        # (3, Wp, Cin, Wp, Cout)
    return wb.reshape(kh, Wp * Cin, Wp * Cout)


@jax.jit
def down_conv_pallas(x_nchw, params):
    """x_nchw: (N, Cin, H, W) float32 -> (N, Cout, H//2, W//2) float32."""
    w1, b1, g1, bt1, w2, b2, g2, bt2 = params
    del b1, b2  # conv bias is exactly cancelled by batch-stat BatchNorm
    N, Cin, H, W = x_nchw.shape
    Hp, Wp = H // 2, W // 2
    Cout = w1.shape[-1]

    # NCHW -> (2, 2, N, Hp, Wp*Cin): pooling taps as dense leading axes,
    # (width, channel) collapsed into the lane dim.  bf16 input: max-pool is
    # exact under monotone rounding and the MXU operand is bf16 anyway.
    x = x_nchw.astype(jnp.bfloat16).reshape(N, Cin, Hp, 2, Wp, 2)
    x = jnp.transpose(x, (3, 5, 0, 2, 4, 1)).reshape(2, 2, N, Hp, Wp * Cin)

    w1b = _band_weights(w1.astype(jnp.float32), Wp).astype(jnp.bfloat16)
    w2b = _band_weights(w2.astype(jnp.float32), Wp).astype(jnp.bfloat16)
    fold = jnp.tile(jnp.eye(Cout, dtype=jnp.float32), (Wp, 1))  # (Wp*Cout, Cout)
    bcast = fold.T                                               # (Cout, Wp*Cout)

    # VMEM budget from actual resident buffers (+2x headroom for compiler
    # scratch and live f32 intermediates), clamped for portability across
    # 64 MiB (v7x) and 128 MiB (v5e/v6e) parts.
    resident_bytes = (
        x.size * 2                                       # pooled-tap input (bf16)
        + w1b.size * 2 + w2b.size * 2                    # banded weights (bf16)
        + fold.size * 4 + bcast.size * 4                 # BN fold/broadcast mats
        + 4 * Cout * 4                                   # gammas / betas
        + N * Hp * Wp * Cout * 4                         # output
        + N * (Hp + 16) * Wp * (Cin + Cout) * 4          # row-padded scratch
        + 3 * N * Hp * Wp * Cout * 4                     # acc / y1 / y2 values
    )
    vmem_limit = int(min(max(2 * resident_bytes, 16 * 2**20), 56 * 2**20))

    vmem = pl.BlockSpec(memory_space=pltpu.MemorySpace.VMEM)
    out2d = pl.pallas_call(
        _down_conv_kernel,
        out_shape=jax.ShapeDtypeStruct((N * Hp, Wp * Cout), jnp.float32),
        in_specs=[vmem] * 9,
        out_specs=vmem,
        scratch_shapes=[
            pltpu.VMEM((N, Hp + 16, Wp * Cin), jnp.float32),
            pltpu.VMEM((N, Hp + 16, Wp * Cout), jnp.float32),
        ],
        compiler_params=pltpu.CompilerParams(vmem_limit_bytes=vmem_limit),
    )(
        x, w1b, g1.reshape(1, Cout), bt1.reshape(1, Cout),
        w2b, g2.reshape(1, Cout), bt2.reshape(1, Cout),
        fold, bcast,
    )

    # (N*Hp, Wp*Cout) -> NCHW
    return jnp.transpose(out2d.reshape(N, Hp, Wp, Cout), (0, 3, 1, 2))


def make_params(key, channels_in, channels_out):
    """PyTorch-like init (conv uniform, BN gamma=1, beta=0).  Biases are kept
    for the reference model even though the kernel can drop them."""
    k1, k2, k3, k4 = jax.random.split(key, 4)
    fan1 = channels_in * 9
    fan2 = channels_out * 9
    bd1 = 1.0 / jnp.sqrt(fan1)
    bd2 = 1.0 / jnp.sqrt(fan2)
    # weights stored HWIO: (3, 3, Cin, Cout)
    w1 = jax.random.uniform(k1, (3, 3, channels_in, channels_out),
                            jnp.float32, -bd1, bd1)
    b1 = jax.random.uniform(k2, (channels_out,), jnp.float32, -bd1, bd1)
    w2 = jax.random.uniform(k3, (3, 3, channels_out, channels_out),
                            jnp.float32, -bd2, bd2)
    b2 = jax.random.uniform(k4, (channels_out,), jnp.float32, -bd2, bd2)
    g1 = jnp.ones((channels_out,), jnp.float32)
    bt1 = jnp.zeros((channels_out,), jnp.float32)
    g2 = jnp.ones((channels_out,), jnp.float32)
    bt2 = jnp.zeros((channels_out,), jnp.float32)
    return (w1, b1, g1, bt1, w2, b2, g2, bt2)


def down_conv_reference(x_nchw, params):
    """Pure-JAX (XLA, f32, with conv bias) reference of the same forward."""
    w1, b1, g1, bt1, w2, b2, g2, bt2 = params
    x = jnp.transpose(x_nchw, (0, 2, 3, 1)).astype(jnp.float32)
    N, H, W, C = x.shape
    x = x.reshape(N, H // 2, 2, W // 2, 2, C).max(axis=(2, 4))

    def conv_bn_relu(inp, w, b, g, bt):
        y = lax.conv_general_dilated(
            inp, w, window_strides=(1, 1), padding="SAME",
            dimension_numbers=("NHWC", "HWIO", "NHWC")) + b
        m = y.mean(axis=(0, 1, 2), keepdims=True)
        v = ((y - m) ** 2).mean(axis=(0, 1, 2), keepdims=True)
        y = (y - m) / jnp.sqrt(v + BN_EPS) * g + bt
        return jnp.maximum(y, 0.0)

    y = conv_bn_relu(x, w1, b1, g1, bt1)
    y = conv_bn_relu(y, w2, b2, g2, bt2)
    return jnp.transpose(y, (0, 3, 1, 2))


if __name__ == "__main__":
    N, C_IN, C_OUT, H, W = 2, 4, 8, 16, 16

    key = jax.random.PRNGKey(0)
    kx, kp = jax.random.split(key)
    x = jax.random.normal(kx, (N, C_IN, H, W), jnp.float32)
    params = make_params(kp, C_IN, C_OUT)

    out = jax.block_until_ready(down_conv_pallas(x, params))
    assert out.shape == (N, C_OUT, H // 2, W // 2), out.shape

    ref = jax.block_until_ready(down_conv_reference(x, params))
    # bf16 MXU operands (f32 accumulation) -> loosened tolerance vs f32 path.
    max_err = float(jnp.max(jnp.abs(out - ref)))
    assert jnp.allclose(out, ref, atol=5e-2, rtol=5e-2), max_err

    print("KERNEL_OK")
</pallas_src>

<mosaic_0001>
module attributes {stable_mosaic.version = 11 : i64} {
  func.func @_down_conv_kernel(%arg0: memref<2x2x2x8x32xbf16, #tpu.memory_space<vmem>>, %arg1: memref<3x32x64xbf16, #tpu.memory_space<vmem>>, %arg2: memref<1x8xf32, #tpu.memory_space<vmem>>, %arg3: memref<1x8xf32, #tpu.memory_space<vmem>>, %arg4: memref<3x64x64xbf16, #tpu.memory_space<vmem>>, %arg5: memref<1x8xf32, #tpu.memory_space<vmem>>, %arg6: memref<1x8xf32, #tpu.memory_space<vmem>>, %arg7: memref<64x8xf32, #tpu.memory_space<vmem>>, %arg8: memref<8x64xf32, #tpu.memory_space<vmem>>, %arg9: memref<16x64xf32, #tpu.memory_space<vmem>>, %arg10: memref<2x24x32xf32, #tpu.memory_space<vmem>>, %arg11: memref<2x24x64xf32, #tpu.memory_space<vmem>>) attributes {dimension_semantics = [], scalar_prefetch = 0 : i64, scratch_operands = 2 : i64, tpu.core_type = #tpu.core_type<tc>} {
    %c0 = arith.constant 0 : index
    %c0_0 = arith.constant 0 : index
    %c0_1 = arith.constant 0 : index
    %c0_2 = arith.constant 0 : index
    %c0_3 = arith.constant 0 : index
    %0 = vector.load %arg0[%c0, %c0_0, %c0_1, %c0_2, %c0_3] : memref<2x2x2x8x32xbf16, #tpu.memory_space<vmem>>, vector<1x1x2x8x32xbf16>
    %1 = vector.shape_cast %0 : vector<1x1x2x8x32xbf16> to vector<2x8x32xbf16>
    %c0_4 = arith.constant 0 : index
    %c1 = arith.constant 1 : index
    %c0_5 = arith.constant 0 : index
    %c0_6 = arith.constant 0 : index
    %c0_7 = arith.constant 0 : index
    %2 = vector.load %arg0[%c0_4, %c1, %c0_5, %c0_6, %c0_7] : memref<2x2x2x8x32xbf16, #tpu.memory_space<vmem>>, vector<1x1x2x8x32xbf16>
    %3 = vector.shape_cast %2 : vector<1x1x2x8x32xbf16> to vector<2x8x32xbf16>
    %4 = arith.maximumf %1, %3 : vector<2x8x32xbf16>
    %c1_8 = arith.constant 1 : index
    %c0_9 = arith.constant 0 : index
    %c0_10 = arith.constant 0 : index
    %c0_11 = arith.constant 0 : index
    %c0_12 = arith.constant 0 : index
    %5 = vector.load %arg0[%c1_8, %c0_9, %c0_10, %c0_11, %c0_12] : memref<2x2x2x8x32xbf16, #tpu.memory_space<vmem>>, vector<1x1x2x8x32xbf16>
    %6 = vector.shape_cast %5 : vector<1x1x2x8x32xbf16> to vector<2x8x32xbf16>
    %c1_13 = arith.constant 1 : index
    %c1_14 = arith.constant 1 : index
    %c0_15 = arith.constant 0 : index
    %c0_16 = arith.constant 0 : index
    %c0_17 = arith.constant 0 : index
    %7 = vector.load %arg0[%c1_13, %c1_14, %c0_15, %c0_16, %c0_17] : memref<2x2x2x8x32xbf16, #tpu.memory_space<vmem>>, vector<1x1x2x8x32xbf16>
    %8 = vector.shape_cast %7 : vector<1x1x2x8x32xbf16> to vector<2x8x32xbf16>
    %9 = arith.maximumf %6, %8 : vector<2x8x32xbf16>
    %10 = arith.maximumf %4, %9 : vector<2x8x32xbf16>
    %11 = arith.extf %10 : vector<2x8x32xbf16> to vector<2x8x32xf32>
    %cst = arith.constant 0.000000e+00 : f32
    %12 = vector.broadcast %cst : f32 to vector<2x8x32xf32>
    %c0_18 = arith.constant 0 : index
    %c0_19 = arith.constant 0 : index
    %c0_20 = arith.constant 0 : index
    %13 = vector.load %arg10[%c0_18, %c0_19, %c0_20] : memref<2x24x32xf32, #tpu.memory_space<vmem>>, vector<2x8x32xf32>
    tpu.vector_store %arg10[%c0_18, %c0_19, %c0_20], %12 {strides = array<i32>} : memref<2x24x32xf32, #tpu.memory_space<vmem>>, vector<2x8x32xf32>,
    %c0_21 = arith.constant 0 : index
    %c16 = arith.constant 16 : index
    %c0_22 = arith.constant 0 : index
    %14 = vector.load %arg10[%c0_21, %c16, %c0_22] : memref<2x24x32xf32, #tpu.memory_space<vmem>>, vector<2x8x32xf32>
    tpu.vector_store %arg10[%c0_21, %c16, %c0_22], %12 {strides = array<i32>} : memref<2x24x32xf32, #tpu.memory_space<vmem>>, vector<2x8x32xf32>,
    %c0_23 = arith.constant 0 : index
    %c8 = arith.constant 8 : index
    %c0_24 = arith.constant 0 : index
    %15 = vector.load %arg10[%c0_23, %c8, %c0_24] : memref<2x24x32xf32, #tpu.memory_space<vmem>>, vector<2x8x32xf32>
    tpu.vector_store %arg10[%c0_23, %c8, %c0_24], %11 {strides = array<i32>} : memref<2x24x32xf32, #tpu.memory_space<vmem>>, vector<2x8x32xf32>,
    %cst_25 = arith.constant 0.000000e+00 : f32
    %16 = vector.broadcast %cst_25 : f32 to vector<16x64xf32>
    %c0_26 = arith.constant 0 : index
    %c7 = arith.constant 7 : index
    %c0_27 = arith.constant 0 : index
    %17 = vector.load %arg10[%c0_26, %c7, %c0_27] : memref<2x24x32xf32, #tpu.memory_space<vmem>>, vector<2x8x32xf32>
    %18 = vector.shape_cast %17 : vector<2x8x32xf32> to vector<16x32xf32>
    %19 = arith.truncf %18 : vector<16x32xf32> to vector<16x32xbf16>
    %c0_28 = arith.constant 0 : index
    %c0_29 = arith.constant 0 : index
    %c0_30 = arith.constant 0 : index
    %20 = vector.load %arg1[%c0_28, %c0_29, %c0_30] : memref<3x32x64xbf16, #tpu.memory_space<vmem>>, vector<1x32x64xbf16>
    %21 = vector.shape_cast %20 : vector<1x32x64xbf16> to vector<32x64xbf16>
    %cst_31 = arith.constant dense<0.000000e+00> : vector<16x64xf32>
    %22 = tpu.matmul %19, %21, %cst_31 {dimension_numbers = #tpu.dot_dimension_numbers<[1], [0], [0], [1], [0, 0, 1, 1], [], []>} : vector<16x32xbf16>, vector<32x64xbf16>, vector<16x64xf32> -> vector<16x64xf32>
    %23 = arith.addf %16, %22 : vector<16x64xf32>
    %c0_32 = arith.constant 0 : index
    %c8_33 = arith.constant 8 : index
    %c0_34 = arith.constant 0 : index
    %24 = vector.load %arg10[%c0_32, %c8_33, %c0_34] : memref<2x24x32xf32, #tpu.memory_space<vmem>>, vector<2x8x32xf32>
    %25 = vector.shape_cast %24 : vector<2x8x32xf32> to vector<16x32xf32>
    %26 = arith.truncf %25 : vector<16x32xf32> to vector<16x32xbf16>
    %c1_35 = arith.constant 1 : index
    %c0_36 = arith.constant 0 : index
    %c0_37 = arith.constant 0 : index
    %27 = vector.load %arg1[%c1_35, %c0_36, %c0_37] : memref<3x32x64xbf16, #tpu.memory_space<vmem>>, vector<1x32x64xbf16>
    %28 = vector.shape_cast %27 : vector<1x32x64xbf16> to vector<32x64xbf16>
    %cst_38 = arith.constant dense<0.000000e+00> : vector<16x64xf32>
    %29 = tpu.matmul %26, %28, %cst_38 {dimension_numbers = #tpu.dot_dimension_numbers<[1], [0], [0], [1], [0, 0, 1, 1], [], []>} : vector<16x32xbf16>, vector<32x64xbf16>, vector<16x64xf32> -> vector<16x64xf32>
    %30 = arith.addf %23, %29 : vector<16x64xf32>
    %c0_39 = arith.constant 0 : index
    %c9 = arith.constant 9 : index
    %c0_40 = arith.constant 0 : index
    %31 = vector.load %arg10[%c0_39, %c9, %c0_40] : memref<2x24x32xf32, #tpu.memory_space<vmem>>, vector<2x8x32xf32>
    %32 = vector.shape_cast %31 : vector<2x8x32xf32> to vector<16x32xf32>
    %33 = arith.truncf %32 : vector<16x32xf32> to vector<16x32xbf16>
    %c2 = arith.constant 2 : index
    %c0_41 = arith.constant 0 : index
    %c0_42 = arith.constant 0 : index
    %34 = vector.load %arg1[%c2, %c0_41, %c0_42] : memref<3x32x64xbf16, #tpu.memory_space<vmem>>, vector<1x32x64xbf16>
    %35 = vector.shape_cast %34 : vector<1x32x64xbf16> to vector<32x64xbf16>
    %cst_43 = arith.constant dense<0.000000e+00> : vector<16x64xf32>
    %36 = tpu.matmul %33, %35, %cst_43 {dimension_numbers = #tpu.dot_dimension_numbers<[1], [0], [0], [1], [0, 0, 1, 1], [], []>} : vector<16x32xbf16>, vector<32x64xbf16>, vector<16x64xf32> -> vector<16x64xf32>
    %37 = arith.addf %30, %36 : vector<16x64xf32>
    %cst_44 = arith.constant dense<0.000000e+00> : vector<64xf32>
    %38 = vector.multi_reduction <add>, %37, %cst_44 [0] : vector<16x64xf32> to vector<64xf32>
    %39 = vector.shape_cast %38 : vector<64xf32> to vector<1x64xf32>
    %40 = arith.mulf %37, %37 : vector<16x64xf32>
    %cst_45 = arith.constant dense<0.000000e+00> : vector<64xf32>
    %41 = vector.multi_reduction <add>, %40, %cst_45 [0] : vector<16x64xf32> to vector<64xf32>
    %42 = vector.shape_cast %41 : vector<64xf32> to vector<1x64xf32>
    %c0_46 = arith.constant 0 : index
    %c0_47 = arith.constant 0 : index
    %43 = vector.load %arg7[%c0_46, %c0_47] : memref<64x8xf32, #tpu.memory_space<vmem>>, vector<64x8xf32>
    %cst_48 = arith.constant dense<0.000000e+00> : vector<1x8xf32>
    %44 = tpu.matmul %39, %43, %cst_48 {dimension_numbers = #tpu.dot_dimension_numbers<[1], [0], [0], [1], [0, 0, 1, 1], [], []>} : vector<1x64xf32>, vector<64x8xf32>, vector<1x8xf32> -> vector<1x8xf32>
    %cst_49 = arith.constant 7.812500e-03 : f32
    %45 = vector.broadcast %cst_49 : f32 to vector<1x8xf32>
    %46 = arith.mulf %44, %45 : vector<1x8xf32>
    %c0_50 = arith.constant 0 : index
    %c0_51 = arith.constant 0 : index
    %47 = vector.load %arg7[%c0_50, %c0_51] : memref<64x8xf32, #tpu.memory_space<vmem>>, vector<64x8xf32>
    %cst_52 = arith.constant dense<0.000000e+00> : vector<1x8xf32>
    %48 = tpu.matmul %42, %47, %cst_52 {dimension_numbers = #tpu.dot_dimension_numbers<[1], [0], [0], [1], [0, 0, 1, 1], [], []>} : vector<1x64xf32>, vector<64x8xf32>, vector<1x8xf32> -> vector<1x8xf32>
    %cst_53 = arith.constant 7.812500e-03 : f32
    %49 = vector.broadcast %cst_53 : f32 to vector<1x8xf32>
    %50 = arith.mulf %48, %49 : vector<1x8xf32>
    %51 = arith.mulf %46, %46 : vector<1x8xf32>
    %52 = arith.subf %50, %51 : vector<1x8xf32>
    %cst_54 = arith.constant 0.000000e+00 : f32
    %53 = vector.broadcast %cst_54 : f32 to vector<1x8xf32>
    %54 = arith.maximumf %52, %53 : vector<1x8xf32>
    %c0_55 = arith.constant 0 : index
    %c0_56 = arith.constant 0 : index
    %55 = vector.load %arg2[%c0_55, %c0_56] : memref<1x8xf32, #tpu.memory_space<vmem>>, vector<1x8xf32>
    %cst_57 = arith.constant 9.99999974E-6 : f32
    %56 = vector.broadcast %cst_57 : f32 to vector<1x8xf32>
    %57 = arith.addf %54, %56 : vector<1x8xf32>
    %58 = math.rsqrt %57 : vector<1x8xf32>
    %59 = arith.mulf %55, %58 : vector<1x8xf32>
    %c0_58 = arith.constant 0 : index
    %c0_59 = arith.constant 0 : index
    %60 = vector.load %arg3[%c0_58, %c0_59] : memref<1x8xf32, #tpu.memory_space<vmem>>, vector<1x8xf32>
    %61 = arith.mulf %46, %59 : vector<1x8xf32>
    %62 = arith.subf %60, %61 : vector<1x8xf32>
    %c0_60 = arith.constant 0 : index
    %c0_61 = arith.constant 0 : index
    %63 = vector.load %arg8[%c0_60, %c0_61] : memref<8x64xf32, #tpu.memory_space<vmem>>, vector<8x64xf32>
    %cst_62 = arith.constant dense<0.000000e+00> : vector<1x64xf32>
    %64 = tpu.matmul %59, %63, %cst_62 {dimension_numbers = #tpu.dot_dimension_numbers<[1], [0], [0], [1], [0, 0, 1, 1], [], []>} : vector<1x8xf32>, vector<8x64xf32>, vector<1x64xf32> -> vector<1x64xf32>
    %c0_63 = arith.constant 0 : index
    %c0_64 = arith.constant 0 : index
    %65 = vector.load %arg8[%c0_63, %c0_64] : memref<8x64xf32, #tpu.memory_space<vmem>>, vector<8x64xf32>
    %cst_65 = arith.constant dense<0.000000e+00> : vector<1x64xf32>
    %66 = tpu.matmul %62, %65, %cst_65 {dimension_numbers = #tpu.dot_dimension_numbers<[1], [0], [0], [1], [0, 0, 1, 1], [], []>} : vector<1x8xf32>, vector<8x64xf32>, vector<1x64xf32> -> vector<1x64xf32>
    %67 = vector.broadcast %64 : vector<1x64xf32> to vector<16x64xf32>
    %68 = arith.mulf %37, %67 : vector<16x64xf32>
    %69 = vector.broadcast %66 : vector<1x64xf32> to vector<16x64xf32>
    %70 = arith.addf %68, %69 : vector<16x64xf32>
    %cst_66 = arith.constant 0.000000e+00 : f32
    %71 = vector.broadcast %cst_66 : f32 to vector<16x64xf32>
    %72 = arith.maximumf %70, %71 : vector<16x64xf32>
    %73 = vector.shape_cast %72 : vector<16x64xf32> to vector<2x8x64xf32>
    %cst_67 = arith.constant 0.000000e+00 : f32
    %74 = vector.broadcast %cst_67 : f32 to vector<2x8x64xf32>
    %c0_68 = arith.constant 0 : index
    %c0_69 = arith.constant 0 : index
    %c0_70 = arith.constant 0 : index
    %75 = vector.load %arg11[%c0_68, %c0_69, %c0_70] : memref<2x24x64xf32, #tpu.memory_space<vmem>>, vector<2x8x64xf32>
    tpu.vector_store %arg11[%c0_68, %c0_69, %c0_70], %74 {strides = array<i32>} : memref<2x24x64xf32, #tpu.memory_space<vmem>>, vector<2x8x64xf32>,
    %c0_71 = arith.constant 0 : index
    %c16_72 = arith.constant 16 : index
    %c0_73 = arith.constant 0 : index
    %76 = vector.load %arg11[%c0_71, %c16_72, %c0_73] : memref<2x24x64xf32, #tpu.memory_space<vmem>>, vector<2x8x64xf32>
    tpu.vector_store %arg11[%c0_71, %c16_72, %c0_73], %74 {strides = array<i32>} : memref<2x24x64xf32, #tpu.memory_space<vmem>>, vector<2x8x64xf32>,
    %c0_74 = arith.constant 0 : index
    %c8_75 = arith.constant 8 : index
    %c0_76 = arith.constant 0 : index
    %77 = vector.load %arg11[%c0_74, %c8_75, %c0_76] : memref<2x24x64xf32, #tpu.memory_space<vmem>>, vector<2x8x64xf32>
    tpu.vector_store %arg11[%c0_74, %c8_75, %c0_76], %73 {strides = array<i32>} : memref<2x24x64xf32, #tpu.memory_space<vmem>>, vector<2x8x64xf32>,
    %cst_77 = arith.constant 0.000000e+00 : f32
    %78 = vector.broadcast %cst_77 : f32 to vector<16x64xf32>
    %c0_78 = arith.constant 0 : index
    %c7_79 = arith.constant 7 : index
    %c0_80 = arith.constant 0 : index
    %79 = vector.load %arg11[%c0_78, %c7_79, %c0_80] : memref<2x24x64xf32, #tpu.memory_space<vmem>>, vector<2x8x64xf32>
    %80 = vector.shape_cast %79 : vector<2x8x64xf32> to vector<16x64xf32>
    %81 = arith.truncf %80 : vector<16x64xf32> to vector<16x64xbf16>
    %c0_81 = arith.constant 0 : index
    %c0_82 = arith.constant 0 : index
    %c0_83 = arith.constant 0 : index
    %82 = vector.load %arg4[%c0_81, %c0_82, %c0_83] : memref<3x64x64xbf16, #tpu.memory_space<vmem>>, vector<1x64x64xbf16>
    %83 = vector.shape_cast %82 : vector<1x64x64xbf16> to vector<64x64xbf16>
    %cst_84 = arith.constant dense<0.000000e+00> : vector<16x64xf32>
    %84 = tpu.matmul %81, %83, %cst_84 {dimension_numbers = #tpu.dot_dimension_numbers<[1], [0], [0], [1], [0, 0, 1, 1], [], []>} : vector<16x64xbf16>, vector<64x64xbf16>, vector<16x64xf32> -> vector<16x64xf32>
    %85 = arith.addf %78, %84 : vector<16x64xf32>
    %c0_85 = arith.constant 0 : index
    %c8_86 = arith.constant 8 : index
    %c0_87 = arith.constant 0 : index
    %86 = vector.load %arg11[%c0_85, %c8_86, %c0_87] : memref<2x24x64xf32, #tpu.memory_space<vmem>>, vector<2x8x64xf32>
    %87 = vector.shape_cast %86 : vector<2x8x64xf32> to vector<16x64xf32>
    %88 = arith.truncf %87 : vector<16x64xf32> to vector<16x64xbf16>
    %c1_88 = arith.constant 1 : index
    %c0_89 = arith.constant 0 : index
    %c0_90 = arith.constant 0 : index
    %89 = vector.load %arg4[%c1_88, %c0_89, %c0_90] : memref<3x64x64xbf16, #tpu.memory_space<vmem>>, vector<1x64x64xbf16>
    %90 = vector.shape_cast %89 : vector<1x64x64xbf16> to vector<64x64xbf16>
    %cst_91 = arith.constant dense<0.000000e+00> : vector<16x64xf32>
    %91 = tpu.matmul %88, %90, %cst_91 {dimension_numbers = #tpu.dot_dimension_numbers<[1], [0], [0], [1], [0, 0, 1, 1], [], []>} : vector<16x64xbf16>, vector<64x64xbf16>, vector<16x64xf32> -> vector<16x64xf32>
    %92 = arith.addf %85, %91 : vector<16x64xf32>
    %c0_92 = arith.constant 0 : index
    %c9_93 = arith.constant 9 : index
    %c0_94 = arith.constant 0 : index
    %93 = vector.load %arg11[%c0_92, %c9_93, %c0_94] : memref<2x24x64xf32, #tpu.memory_space<vmem>>, vector<2x8x64xf32>
    %94 = vector.shape_cast %93 : vector<2x8x64xf32> to vector<16x64xf32>
    %95 = arith.truncf %94 : vector<16x64xf32> to vector<16x64xbf16>
    %c2_95 = arith.constant 2 : index
    %c0_96 = arith.constant 0 : index
    %c0_97 = arith.constant 0 : index
    %96 = vector.load %arg4[%c2_95, %c0_96, %c0_97] : memref<3x64x64xbf16, #tpu.memory_space<vmem>>, vector<1x64x64xbf16>
    %97 = vector.shape_cast %96 : vector<1x64x64xbf16> to vector<64x64xbf16>
    %cst_98 = arith.constant dense<0.000000e+00> : vector<16x64xf32>
    %98 = tpu.matmul %95, %97, %cst_98 {dimension_numbers = #tpu.dot_dimension_numbers<[1], [0], [0], [1], [0, 0, 1, 1], [], []>} : vector<16x64xbf16>, vector<64x64xbf16>, vector<16x64xf32> -> vector<16x64xf32>
    %99 = arith.addf %92, %98 : vector<16x64xf32>
    %cst_99 = arith.constant dense<0.000000e+00> : vector<64xf32>
    %100 = vector.multi_reduction <add>, %99, %cst_99 [0] : vector<16x64xf32> to vector<64xf32>
    %101 = vector.shape_cast %100 : vector<64xf32> to vector<1x64xf32>
    %102 = arith.mulf %99, %99 : vector<16x64xf32>
    %cst_100 = arith.constant dense<0.000000e+00> : vector<64xf32>
    %103 = vector.multi_reduction <add>, %102, %cst_100 [0] : vector<16x64xf32> to vector<64xf32>
    %104 = vector.shape_cast %103 : vector<64xf32> to vector<1x64xf32>
    %c0_101 = arith.constant 0 : index
    %c0_102 = arith.constant 0 : index
    %105 = vector.load %arg7[%c0_101, %c0_102] : memref<64x8xf32, #tpu.memory_space<vmem>>, vector<64x8xf32>
    %cst_103 = arith.constant dense<0.000000e+00> : vector<1x8xf32>
    %106 = tpu.matmul %101, %105, %cst_103 {dimension_numbers = #tpu.dot_dimension_numbers<[1], [0], [0], [1], [0, 0, 1, 1], [], []>} : vector<1x64xf32>, vector<64x8xf32>, vector<1x8xf32> -> vector<1x8xf32>
    %cst_104 = arith.constant 7.812500e-03 : f32
    %107 = vector.broadcast %cst_104 : f32 to vector<1x8xf32>
    %108 = arith.mulf %106, %107 : vector<1x8xf32>
    %c0_105 = arith.constant 0 : index
    %c0_106 = arith.constant 0 : index
    %109 = vector.load %arg7[%c0_105, %c0_106] : memref<64x8xf32, #tpu.memory_space<vmem>>, vector<64x8xf32>
    %cst_107 = arith.constant dense<0.000000e+00> : vector<1x8xf32>
    %110 = tpu.matmul %104, %109, %cst_107 {dimension_numbers = #tpu.dot_dimension_numbers<[1], [0], [0], [1], [0, 0, 1, 1], [], []>} : vector<1x64xf32>, vector<64x8xf32>, vector<1x8xf32> -> vector<1x8xf32>
    %cst_108 = arith.constant 7.812500e-03 : f32
    %111 = vector.broadcast %cst_108 : f32 to vector<1x8xf32>
    %112 = arith.mulf %110, %111 : vector<1x8xf32>
    %113 = arith.mulf %108, %108 : vector<1x8xf32>
    %114 = arith.subf %112, %113 : vector<1x8xf32>
    %cst_109 = arith.constant 0.000000e+00 : f32
    %115 = vector.broadcast %cst_109 : f32 to vector<1x8xf32>
    %116 = arith.maximumf %114, %115 : vector<1x8xf32>
    %c0_110 = arith.constant 0 : index
    %c0_111 = arith.constant 0 : index
    %117 = vector.load %arg5[%c0_110, %c0_111] : memref<1x8xf32, #tpu.memory_space<vmem>>, vector<1x8xf32>
    %cst_112 = arith.constant 9.99999974E-6 : f32
    %118 = vector.broadcast %cst_112 : f32 to vector<1x8xf32>
    %119 = arith.addf %116, %118 : vector<1x8xf32>
    %120 = math.rsqrt %119 : vector<1x8xf32>
    %121 = arith.mulf %117, %120 : vector<1x8xf32>
    %c0_113 = arith.constant 0 : index
    %c0_114 = arith.constant 0 : index
    %122 = vector.load %arg6[%c0_113, %c0_114] : memref<1x8xf32, #tpu.memory_space<vmem>>, vector<1x8xf32>
    %123 = arith.mulf %108, %121 : vector<1x8xf32>
    %124 = arith.subf %122, %123 : vector<1x8xf32>
    %c0_115 = arith.constant 0 : index
    %c0_116 = arith.constant 0 : index
    %125 = vector.load %arg8[%c0_115, %c0_116] : memref<8x64xf32, #tpu.memory_space<vmem>>, vector<8x64xf32>
    %cst_117 = arith.constant dense<0.000000e+00> : vector<1x64xf32>
    %126 = tpu.matmul %121, %125, %cst_117 {dimension_numbers = #tpu.dot_dimension_numbers<[1], [0], [0], [1], [0, 0, 1, 1], [], []>} : vector<1x8xf32>, vector<8x64xf32>, vector<1x64xf32> -> vector<1x64xf32>
    %c0_118 = arith.constant 0 : index
    %c0_119 = arith.constant 0 : index
    %127 = vector.load %arg8[%c0_118, %c0_119] : memref<8x64xf32, #tpu.memory_space<vmem>>, vector<8x64xf32>
    %cst_120 = arith.constant dense<0.000000e+00> : vector<1x64xf32>
    %128 = tpu.matmul %124, %127, %cst_120 {dimension_numbers = #tpu.dot_dimension_numbers<[1], [0], [0], [1], [0, 0, 1, 1], [], []>} : vector<1x8xf32>, vector<8x64xf32>, vector<1x64xf32> -> vector<1x64xf32>
    %129 = vector.broadcast %126 : vector<1x64xf32> to vector<16x64xf32>
    %130 = arith.mulf %99, %129 : vector<16x64xf32>
    %131 = vector.broadcast %128 : vector<1x64xf32> to vector<16x64xf32>
    %132 = arith.addf %130, %131 : vector<16x64xf32>
    %cst_121 = arith.constant 0.000000e+00 : f32
    %133 = vector.broadcast %cst_121 : f32 to vector<16x64xf32>
    %134 = arith.maximumf %132, %133 : vector<16x64xf32>
    %c0_122 = arith.constant 0 : index
    %c0_123 = arith.constant 0 : index
    %135 = vector.load %arg9[%c0_122, %c0_123] : memref<16x64xf32, #tpu.memory_space<vmem>>, vector<16x64xf32>
    tpu.vector_store %arg9[%c0_122, %c0_123], %134 {strides = array<i32>} : memref<16x64xf32, #tpu.memory_space<vmem>>, vector<16x64xf32>,
    return
  }
}

</mosaic_0001>

<bundles_post_ra>
// kernel: tile.9
= control target key start
LH: loop header
LB: loop body
LE: loop exit
PB: predicated region body
PF: predicated region fallthrough
CT: control target
= control target key end

     0   :  { %vm4_vm0 = vcmask 1047556   ;;  %s99_s14 = smov 56   ;;  %s100_s15 = smov 40   ;;  %vm6_vm1 = vcmask 64512   ;;  %vm16_vm2 = vcmask 523712   ;;  %vm26_vm3 = vcmask 458112   ;;  %s196_s0 = inlined_call_operand.vmem [shape: f32[8,8,8], index: 0, kind: input, shape index: {}]   ;;  %s197_s1 = inlined_call_operand.vmem [shape: f32[64,8], index: 1, kind: output, shape index: {}]  }
   0x1   :  { %v78_v0 = vld [vmem:[%s196_s0 + $0x7] ss:$8 sm:$0xf]   ;;  %v82_v3 = vld [vmem:[%s196_s0 + $0x5] ss:$8 sm:$0xf]  }
   0x2   :  { %v79_v1 = vld [vmem:[%s196_s0 + $0x7] ss:$8 sm:$0xf0]   ;;  %v83_v4 = vld [vmem:[%s196_s0 + $0x5] ss:$8 sm:$0xf0]  }
   0x3   :  { %v13_v2 = vsel %vm4_vm0, %v79_v1, %v78_v0  ;;  %v33_v5 = vsel %vm4_vm0, %v83_v4, %v82_v3  ;;  %v80_v6 = vld [vmem:[%s196_s0 + $0x6] ss:$8 sm:$0xf]   ;;  %v84_v8 = vld [vmem:[%s196_s0 + $0x4] ss:$8 sm:$0xf]  }
   0x4   :  { %14 = vrot.lane.b32.xlu0 %v13_v2, %s99_s14  ;;  %34 = vrot.lane.b32.xlu1 %v33_v5, %s100_s15  ;;  %v81_v7 = vld [vmem:[%s196_s0 + $0x6] ss:$8 sm:$0xf0]   ;;  %v85_v9 = vld [vmem:[%s196_s0 + $0x4] ss:$8 sm:$0xf0]  }
   0x5   :  { %v86_v10 = vld [vmem:[%s196_s0 + $0x3] ss:$8 sm:$0xf]   ;;  %v23_v12 = vsel %vm4_vm0, %v81_v7, %v80_v6  ;;  %v43_v14 = vsel %vm4_vm0, %v85_v9, %v84_v8  ;;  %s101_s28 = smov 24   ;;  %s102_s29 = smov 48   ;;  %vm36_vm4 = vcmask 392512  }
   0x6   :  { %v87_v11 = vld [vmem:[%s196_s0 + $0x3] ss:$8 sm:$0xf0]   ;;  %v88_v15 = vld [vmem:[%s196_s0 + $0x2] ss:$8 sm:$0xf]  }
   0x7   :  { %v53_v13 = vsel %vm4_vm0, %v87_v11, %v86_v10  ;;  %v89_v16 = vld [vmem:[%s196_s0 + $0x2] ss:$8 sm:$0xf0]   ;;  %s103_s5 = smov 32   ;;  %s104_s10 = smov 16   ;;  %vm46_vm5 = vcmask 326912  }
   0x8   :  { %54 = vrot.lane.b32.xlu2 %v53_v13, %s101_s28  ;;  %v90_v17 = vld [vmem:[%s196_s0 + $0x1] ss:$8 sm:$0xf]   ;;  %v63_v19 = vsel %vm4_vm0, %v89_v16, %v88_v15  ;;  %s105_s11 = smov 8   ;;  %vm56_vm6 = vcmask 261312   ;;  %vm66_vm7 = vcmask 195712  }
   0x9   :  { %v91_v18 = vld [vmem:[%s196_s0 + $0x1] ss:$8 sm:$0xf0]   ;;  %v2_v21 = vld [vmem:[%s196_s0] ss:$8 sm:$0xf]  }
   0xa   :  { %v73_v20 = vsel %vm4_vm0, %v91_v18, %v90_v17  ;;  %v3_v22 = vld [vmem:[%s196_s0] ss:$8 sm:$0xf0]   ;;  %vm76_vm8 = vcmask 130112  }
   0xb   :  { %v5_v23 = vsel %vm4_vm0, %v3_v22, %v2_v21 }
   0xc   :  { %24 = vrot.lane.b32.xlu0 %v23_v12, %s102_s29  ;;  %44 = vrot.lane.b32.xlu1 %v43_v14, %s103_s5  ;;  %7 = vst.msk [vmem:[%s197_s1] sm:$0xff] %vm6_vm1, %v5_v23  }
  0x10   :  { %64 = vrot.lane.b32.xlu2 %v63_v19, %s104_s10 }
  0x14   :  { %74 = vrot.lane.b32.xlu0 %v73_v20, %s105_s11 }
  0x62   :  { %v55_v24 = vpop.permute.xlu2 %54  }
  0x6a   :  { %v65_v25 = vpop.permute.xlu2 %64  }
  0x76   :  { %v15_v26 = vpop.permute.xlu0 %14   ;;  %v35_v27 = vpop.permute.xlu1 %34  }
  0x77   :  { %17 = vst.msk [vmem:[%s197_s1] sm:$0xff] %vm16_vm2, %v15_v26  }
  0x7e   :  { %v25_v28 = vpop.permute.xlu0 %24   ;;  %v45_v29 = vpop.permute.xlu1 %44  }
  0x7f   :  { %27 = vst.msk [vmem:[%s197_s1] sm:$0xff] %vm26_vm3, %v25_v28  }
  0x80   :  { %37 = vst.msk [vmem:[%s197_s1] sm:$0xff] %vm36_vm4, %v35_v27  }
  0x81   :  { %47 = vst.msk [vmem:[%s197_s1] sm:$0xff] %vm46_vm5, %v45_v29  }
  0x82   :  { %57 = vst.msk [vmem:[%s197_s1] sm:$0xff] %vm56_vm6, %v55_v24  }
  0x83   :  { %67 = vst.msk [vmem:[%s197_s1] sm:$0xff] %vm66_vm7, %v65_v25  }
  0x86   :  { %v75_v30 = vpop.permute.xlu0 %74  }
  0x87   :  { %77 = vst.msk [vmem:[%s197_s1] sm:$0xff] %vm76_vm8, %v75_v30  }

// kernel: down_conv_pallas.1
= control target key start
LH: loop header
LB: loop body
LE: loop exit
PB: predicated region body
PF: predicated region fallthrough
CT: control target
= control target key end

     0   :  { %vm70_vm0 = vcmask 261120   ;;  %v821_v3 = vmov 0.0   ;;  %vm189_vm1 = vcmask 523264   ;;  %vm286_vm5 = vcmask 64512   ;;  %s1085_s1 = inlined_call_operand.vmem [shape: bf16[3,32,64], index: 1, kind: input, shape index: {}]   ;;  %s1086_s0 = inlined_call_operand.vmem [shape: bf16[2,2,2,8,32], index: 0, kind: input, shape index: {}]   ;;  %s1087_s7 = inlined_call_operand.vmem [shape: f32[64,8], index: 7, kind: input, shape index: {}]   ;;  %s1088_s8 = inlined_call_operand.vmem [shape: f32[8,64], index: 8, kind: input, shape index: {}]   ;;  %s1089_s2 = inlined_call_operand.vmem [shape: f32[1,8], index: 2, kind: input, shape index: {}]   ;;  %s1090_s3 = inlined_call_operand.vmem [shape: f32[1,8], index: 3, kind: input, shape index: {}]   ;;  %s1091_s4 = inlined_call_operand.vmem [shape: bf16[3,64,64], index: 4, kind: input, shape index: {}]   ;;  %s1092_s5 = inlined_call_operand.vmem [shape: f32[1,8], index: 5, kind: input, shape index: {}]   ;;  %s1093_s6 = inlined_call_operand.vmem [shape: f32[1,8], index: 6, kind: input, shape index: {}]   ;;  %s1094_s9 = inlined_call_operand.vmem [shape: f32[16,64], index: 9, kind: output, shape index: {}]  }
   0x1   :  { %v782_v0 = vld [vmem:[%s1085_s1 + $0x18] sm:$0xff]  ;;  %v780_v1 = vld [vmem:[%s1085_s1 + $0x8] sm:$0xff]  ;;  %71 = vst.msk [vmem:[#allocation2] sm:$0xff] %vm70_vm0, %v821_v3  ;;  %v781_v4 = vld [vmem:[%s1085_s1 + $0x10] sm:$0xff] }
   0x2   :  { %v784_v2 = vld [vmem:[%s1085_s1 + $0x28] sm:$0xff]  ;;  %v779_v5 = vld [vmem:[%s1085_s1] sm:$0xff]  ;;  %72 = vst.msk [vmem:[#allocation2 + $0x18] sm:$0xff] %vm70_vm0, %v821_v3  ;;  %113 = vmatpush.bf16.msra.mxu0 %v782_v0  ;;  %142 = vmatpush.bf16.msra.mxu1 %v780_v1  ;;  %v814_v8 = vld [vmem:[%s1086_s0 + $0x10] sm:$0xff]  }
   0x3   :  { %v798_v6 = vld [vmem:[%s1086_s0] sm:$0xff]   ;;  %v813_v7 = vld [vmem:[%s1086_s0 + $0x8] sm:$0xff]   ;;  %73 = vst.msk [vmem:[#allocation2 + $0x10] sm:$0xff] %vm70_vm0, %v821_v3  ;;  %179 = vmatpush.bf16.msra.mxu2 %v784_v2  ;;  %v815_v14 = vld [vmem:[%s1086_s0 + $0x18] sm:$0xff]   ;;  %v807_v15 = vunpack.c.l.bf16 %v814_v8  ;;  %v808_v16 = vunpack.c.h.bf16 %v814_v8 }
   0x4   :  { %v783_v9 = vld [vmem:[%s1085_s1 + $0x20] sm:$0xff]  ;;  %v799_v10 = vunpack.c.l.bf16 %v798_v6  ;;  %v800_v11 = vunpack.c.h.bf16 %v798_v6  ;;  %v803_v12 = vunpack.c.l.bf16 %v813_v7  ;;  %v804_v13 = vunpack.c.h.bf16 %v813_v7  ;;  %74 = vst.msk [vmem:[#allocation2 + $0x28] sm:$0xff] %vm70_vm0, %v821_v3  ;;  %v918_v38 = vld [vmem:[%s1087_s7 + $0x38] sm:$0xff]  ;;  %v925_v39 = vld [vmem:[%s1087_s7 + $0x30] sm:$0xff] }
   0x5   :  { %v811_v17 = vunpack.c.l.bf16 %v815_v14  ;;  %v812_v18 = vunpack.c.h.bf16 %v815_v14  ;;  %341 = vst.msk [vmem:[#allocation3] sm:$0xff] %vm189_vm1, %v821_v3  ;;  %229 = vmatpush.msra.mxu3 %v918_v38  ;;  %v932_v40 = vld [vmem:[%s1087_s7 + $0x28] sm:$0xff]  ;;  %v939_v41 = vld [vmem:[%s1087_s7 + $0x20] sm:$0xff]  ;;  %v946_v42 = vld [vmem:[%s1087_s7 + $0x18] sm:$0xff] }
   0x6   :  { %v42_v19 = vmax.f32 %v799_v10, %v803_v12  ;;  %v43_v20 = vmax.f32 %v800_v11, %v804_v13  ;;  %114 = vmatpush.bf16.msra.mxu0 %v781_v4  ;;  %143 = vmatpush.bf16.msra.mxu1 %v779_v5  ;;  %342 = vst.msk [vmem:[#allocation3 + $0x18] sm:$0xff] %vm189_vm1, %v821_v3  ;;  %v951_v43 = vld [vmem:[%s1087_s7 + $0x10] sm:$0xff]  ;;  %v958_v44 = vld [vmem:[%s1087_s7 + $0x8] sm:$0xff]  ;;  %v965_v45 = vld [vmem:[%s1087_s7] sm:$0xff] }
   0x7   :  { %v56_v21 = vmax.f32 %v807_v15, %v811_v17  ;;  %v57_v22 = vmax.f32 %v808_v16, %v812_v18  ;;  %180 = vmatpush.bf16.msra.mxu2 %v783_v9  ;;  %343 = vst.msk [vmem:[#allocation3 + $0x10] sm:$0xff] %vm189_vm1, %v821_v3  ;;  %230 = vmatpush.msra.mxu3 %v925_v39  ;;  %v990_v12 = vld [vmem:[%s1088_s8] sm:$0xff] }
   0x8   :  { %344 = vst.msk [vmem:[#allocation3 + $0x28] sm:$0xff] %vm189_vm1, %v821_v3 }
   0x9   :  { %v64_v23 = vmax.f32 %v42_v19, %v56_v21  ;;  %v65_v24 = vmax.f32 %v43_v20, %v57_v22  ;;  %231 = vmatpush.msra.mxu3 %v932_v40 }
   0xa   :  { %253 = vmatpush.msrb.mxu0 %v918_v38  ;;  %305 = vmatpush.msrb.mxu1 %v990_v12 }
   0xb   :  { %v66_v25 = vpack.c.bf16 %v64_v23, %v64_v23  ;;  %v67_v26 = vpack.c.bf16 %v65_v24, %v65_v24  ;;  %232 = vmatpush.msra.mxu3 %v939_v41  ;;  %328 = vmatpush.msrb.mxu2 %v990_v12 }
   0xc   :  { %254 = vmatpush.msrb.mxu0 %v925_v39 }
   0xd   :  { %v68_v27 = vunpack.c.l.bf16 %v66_v25  ;;  %v69_v28 = vunpack.c.l.bf16 %v67_v26  ;;  %233 = vmatpush.msra.mxu3 %v946_v42  ;;  %v269_v26 = vld [vmem:[%s1089_s2] sm:$0x1] }
   0xe   :  { %255 = vmatpush.msrb.mxu0 %v932_v40 }
   0xf   :  { %75 = vst.msk [vmem:[#allocation2 + $0x8] sm:$0xff] %vm70_vm0, %v68_v27  ;;  %234 = vmatpush.msra.mxu3 %v951_v43 }
  0x10   :  { %76 = vst.msk [vmem:[#allocation2 + $0x20] sm:$0xff] %vm70_vm0, %v69_v28  ;;  %256 = vmatpush.msrb.mxu0 %v939_v41 }
  0x11   :  { %235 = vmatpush.msra.mxu3 %v958_v44 }
  0x12   :  { %257 = vmatpush.msrb.mxu0 %v946_v42 }
  0x13   :  { %236 = vmatpush.msra.mxu3 %v965_v45 }
  0x14   :  { %258 = vmatpush.msrb.mxu0 %v951_v43 }
  0x16   :  { %v84_v29 = vld [vmem:[#allocation2 + $0x8] sm:$0xff]  ;;  %259 = vmatpush.msrb.mxu0 %v958_v44 }
  0x17   :  { %v77_v30 = vld [vmem:[#allocation2 + $0x7] sm:$0xff]  ;;  %v78_v33 = vld [vmem:[#allocation2 + $0x1f] sm:$0xff] }
  0x18   :  { %v150_v31 = vld [vmem:[#allocation2 + $0x9] sm:$0xff]  ;;  %v85_v32 = vld [vmem:[#allocation2 + $0x20] sm:$0xff]  ;;  %v79_v36 = vpack.c.bf16 %v78_v33, %v77_v30  ;;  %260 = vmatpush.msrb.mxu0 %v965_v45  ;;  %v792_v33 = vld [vmem:[%s1091_s4 + $0x38] sm:$0xff] }
  0x19   :  { %v151_v34 = vld [vmem:[#allocation2 + $0x21] sm:$0xff]  ;;  %v86_v35 = vpack.c.bf16 %v85_v32, %v84_v29  ;;  %v282_v30 = vld [vmem:[%s1090_s3] sm:$0x1]  ;;  %401 = vmatpush.bf16.msrb.mxu3 %v792_v33 }
  0x1a   :  { %v152_v37 = vpack.c.bf16 %v151_v34, %v150_v31  ;;  %690 = vmatmul.msk.bf16.vlgmr.msra.gmra.mxu1 %vm70_vm0, %v79_v36  ;;  %v788_v34 = vld [vmem:[%s1091_s4 + $0x18] sm:$0xff]  ;;  %v791_v36 = vld [vmem:[%s1091_s4 + $0x30] sm:$0xff] }
  0x1b   :  { %681 = vmatmul.msk.bf16.vlgmr.msra.gmra.mxu0 %vm70_vm0, %v86_v35  ;;  %v796_v35 = vld [vmem:[%s1091_s4 + $0x58] sm:$0xff] }
  0x1c   :  { %703 = vmatmul.msk.bf16.vlgmr.msra.gmra.mxu2 %vm70_vm0, %v152_v37  ;;  %442 = vmatpush.bf16.msra.mxu0 %v788_v34  ;;  %v787_v37 = vld [vmem:[%s1091_s4 + $0x10] sm:$0xff] }
  0x1d   :  { %546 = vmatpush.msra.mxu2 %v918_v38  ;;  %495 = vmatpush.bf16.msra.mxu1 %v796_v35 }
  0x1e   :  { %402 = vmatpush.bf16.msrb.mxu3 %v791_v36 }
  0x1f   :  { %547 = vmatpush.msra.mxu2 %v925_v39 }
  0x20   :  { %443 = vmatpush.bf16.msra.mxu0 %v787_v37 }
  0x21   :  { %548 = vmatpush.msra.mxu2 %v932_v40 }
  0x23   :  { %549 = vmatpush.msra.mxu2 %v939_v41 }
  0x25   :  { %550 = vmatpush.msra.mxu2 %v946_v42 }
  0x27   :  { %551 = vmatpush.msra.mxu2 %v951_v43 }
  0x29   :  { %552 = vmatpush.msra.mxu2 %v958_v44 }
  0x2b   :  { %553 = vmatpush.msra.mxu2 %v965_v45 }
  0x97   :  { %v145_v47 = vpop.f32.mrf.mxu1 }
  0x98   :  { %v116_v46 = vpop.f32.mrf.mxu0 }
  0x99   :  { %v146_v49 = vadd.f32 %v145_v47, %v116_v46  ;;  %v795_v46 = vld [vmem:[%s1091_s4 + $0x50] sm:$0xff]  ;;  %v790_v47 = vld [vmem:[%s1091_s4 + $0x28] sm:$0xff] }
  0x9a   :  { %496 = vmatpush.bf16.msra.mxu1 %v795_v46  ;;  %403 = vmatpush.bf16.msrb.mxu3 %v790_v47 }
  0x9f   :  { %v182_v48 = vpop.f32.mrf.mxu2  ;;  %v147_v51 = vpop.f32.mrf.mxu1 }
  0xa0   :  { %v118_v50 = vpop.f32.mrf.mxu0  ;;  %v971_v52 = vadd.f32 %v182_v48, %v146_v49  ;;  %v786_v48 = vld [vmem:[%s1091_s4 + $0x8] sm:$0xff] }
  0xa1   :  { %v148_v53 = vadd.f32 %v147_v51, %v118_v50  ;;  %v794_v49 = vld [vmem:[%s1091_s4 + $0x48] sm:$0xff]  ;;  %444 = vmatpush.bf16.msra.mxu0 %v786_v48  ;;  %v789_v50 = vld [vmem:[%s1091_s4 + $0x20] sm:$0xff] }
  0xa2   :  { %v199_v55 = vmul.f32 %v971_v52, %v971_v52  ;;  %v190_v57 = vsel %vm189_vm1, %v971_v52, 0.0  ;;  %v785_v51 = vld [vmem:[%s1091_s4] sm:$0xff]  ;;  %497 = vmatpush.bf16.msra.mxu1 %v794_v49  ;;  %404 = vmatpush.bf16.msrb.mxu3 %v789_v50 }
  0xa4   :  { %v201_v61 = vsel %vm189_vm1, %v199_v55, 0.0 }
  0xa5   :  { %445 = vmatpush.bf16.msra.mxu0 %v785_v51  ;;  %v586_v51 = vld [vmem:[%s1092_s5] sm:$0x1] }
  0xa7   :  { %v184_v54 = vpop.f32.mrf.mxu2 }
  0xa8   :  { %v975_v56 = vadd.f32 %v184_v54, %v148_v53  ;;  %v793_v53 = vld [vmem:[%s1091_s4 + $0x40] sm:$0xff] }
  0xa9   :  { %498 = vmatpush.bf16.msra.mxu1 %v793_v53 }
  0xaa   :  { %v191_v58 = vsel %vm189_vm1, %v975_v56, 0.0  ;;  %v200_v59 = vmul.f32 %v975_v56, %v975_v56 }
  0xab   :  { %v192_v60 = vadd.f32 %v191_v58, %v190_v57 }
  0xac   :  { %v202_v62 = vsel %vm189_vm1, %v200_v59, 0.0 }
  0xad   :  { %v193_v63 = vrot.slane %v192_v60, 4  ;;  %v203_v0 = vadd.f32 %v202_v62, %v201_v61 }
  0xaf   :  { %v204_v1 = vrot.slane %v203_v0, 4  ;;  %v194_v2 = vadd.f32 %v193_v63, %v192_v60 }
  0xb1   :  { %v205_v3 = vadd.f32 %v204_v1, %v203_v0  ;;  %v195_v4 = vrot.slane %v194_v2, 2 }
  0xb3   :  { %v196_v5 = vadd.f32 %v195_v4, %v194_v2  ;;  %v206_v6 = vrot.slane %v205_v3, 2 }
  0xb5   :  { %v197_v7 = vrot.slane %v196_v5, 1  ;;  %v207_v8 = vadd.f32 %v206_v6, %v205_v3 }
  0xb7   :  { %v198_v9 = vadd.f32 %v197_v7, %v196_v5  ;;  %v208_v10 = vrot.slane %v207_v8, 1 }
  0xb9   :  { %704 = vmatmul.msk.f32.vlgmr.msra.gmra.mxu3 %vm189_vm1, %v198_v9  ;;  %v209_v11 = vadd.f32 %v208_v10, %v207_v8 }
  0xba   :  { %570 = vmatpush.msra.mxu3 %v918_v38 }
  0xbb   :  { %705 = vmatmul.msk.f32.vlgmr.msrb.gmra.mxu0 %vm189_vm1, %v209_v11 }
  0xbc   :  { %644 = vmatpush.msrb.mxu0 %v990_v12  ;;  %571 = vmatpush.msra.mxu3 %v925_v39 }
  0xbe   :  { %572 = vmatpush.msra.mxu3 %v932_v40 }
  0xc0   :  { %573 = vmatpush.msra.mxu3 %v939_v41 }
  0xc2   :  { %574 = vmatpush.msra.mxu3 %v946_v42 }
  0xc4   :  { %575 = vmatpush.msra.mxu3 %v951_v43 }
  0xc6   :  { %576 = vmatpush.msra.mxu3 %v958_v44 }
  0xc8   :  { %577 = vmatpush.msra.mxu3 %v965_v45 }
 0x138   :  { %v262_v13 = vpop.f32.mrf.mxu0 }
 0x139   :  { %v265_v16 = vmul.f32 0.0078125, %v262_v13 }
 0x13c   :  { %v238_v14 = vpop.f32.mrf.mxu3 }
 0x13d   :  { %v241_v15 = vmul.f32 0.0078125, %v238_v14 }
 0x13f   :  { %v266_v17 = vmul.f32 %v241_v15, %v241_v15 }
 0x141   :  { %v267_v18 = vsub.f32 %v265_v16, %v266_v17 }
 0x143   :  { %v268_v19 = vmax.f32 %v267_v18, 0.0 }
 0x145   :  { %v270_v20 = vadd.f32 1e-05, %v268_v19 }
 0x147   :  { %817 = vrsqrt.f32 %v270_v20  ;;  %vm277_vm3 = vweird.f32 %v270_v20 }
 0x14d   :  { %v818_v21 = vpop.eup %817 }
 0x14e   :  { %v272_v22 = vmul.f32 %v818_v21, %v270_v20  ;;  %vm278_vm2 = vweird.f32 %v818_v21 }
 0x14f   :  { %vm279_vm4 = vmor %vm277_vm3, %vm278_vm2 }
 0x150   :  { %v273_v23 = vmul.f32 %v818_v21, %v272_v22 }
 0x152   :  { %v274_v24 = vmul.f32 0.5, %v273_v23 }
 0x154   :  { %v275_v25 = vsub.f32 1.5, %v274_v24 }
 0x156   :  { %v276_v27 = vmul.f32 %v818_v21, %v275_v25 }
 0x158   :  { %v280_v28 = vsel %vm279_vm4, %v818_v21, %v276_v27 }
 0x159   :  { %v281_v29 = vmul.f32 %v280_v28, %v269_v26 }
 0x15b   :  { %v283_v31 = vmul.f32 %v281_v29, %v241_v15  ;;  %706 = vmatmul.msk.f32.vlgmr.msrb.gmra.mxu1 %vm286_vm5, %v281_v29 }
 0x15d   :  { %v284_v32 = vsub.f32 %v282_v30, %v283_v31 }
 0x15f   :  { %707 = vmatmul.msk.f32.vlgmr.msrb.gmra.mxu2 %vm286_vm5, %v284_v32 }
 0x160   :  { %621 = vmatpush.msrb.mxu2 %v990_v12 }
 0x1d8   :  { %v307_v54 = vpop.f32.mrf.mxu1 }
 0x1d9   :  { %v333_v55 = vperm.slane %v307_v54, 0 }
 0x1db   :  { %v334_v38 = vmul.f32 %v333_v55, %v971_v52  ;;  %v335_v58 = vmul.f32 %v333_v55, %v975_v56 }
 0x1e2   :  { %v330_v57 = vpop.f32.mrf.mxu2 }
 0x1e3   :  { %v336_v39 = vperm.slane %v330_v57, 0  ;;  %v599_v57 = vld [vmem:[%s1093_s6] sm:$0x1] }
 0x1e5   :  { %v337_v59 = vadd.f32 %v336_v39, %v334_v38  ;;  %v338_v40 = vadd.f32 %v336_v39, %v335_v58 }
 0x1e7   :  { %v339_v60 = vmax.f32 %v337_v59, 0.0  ;;  %v340_v41 = vmax.f32 %v338_v40, 0.0 }
 0x1e9   :  { %345 = vst.msk [vmem:[#allocation3 + $0x8] sm:$0xff] %vm189_vm1, %v339_v60 }
 0x1ea   :  { %346 = vst.msk [vmem:[#allocation3 + $0x20] sm:$0xff] %vm189_vm1, %v340_v41 }
 0x1f0   :  { %v358_v42 = vld [vmem:[#allocation3 + $0x8] sm:$0xff] }
 0x1f1   :  { %v347_v43 = vld [vmem:[#allocation3 + $0x7] sm:$0xff]  ;;  %v348_v62 = vld [vmem:[#allocation3 + $0x1f] sm:$0xff] }
 0x1f2   :  { %v452_v44 = vld [vmem:[#allocation3 + $0x9] sm:$0xff]  ;;  %v359_v61 = vld [vmem:[#allocation3 + $0x20] sm:$0xff]  ;;  %v349_v0 = vpack.c.bf16 %v348_v62, %v347_v43 }
 0x1f3   :  { %v453_v45 = vld [vmem:[#allocation3 + $0x21] sm:$0xff]  ;;  %v360_v63 = vpack.c.bf16 %v359_v61, %v358_v42 }
 0x1f4   :  { %v454_v52 = vpack.c.bf16 %v453_v45, %v452_v44  ;;  %749 = vmatmul.msk.bf16.vlgmr.msra.gmra.mxu0 %vm189_vm1, %v349_v0 }
 0x1f5   :  { %732 = vmatmul.msk.bf16.vlgmr.msrb.gmra.mxu3 %vm189_vm1, %v360_v63 }
 0x1f6   :  { %774 = vmatmul.msk.bf16.vlgmr.msra.gmra.mxu1 %vm189_vm1, %v454_v52 }
 0x271   :  { %v447_v56 = vpop.f32.mrf.mxu0 }
 0x273   :  { %v500_v1 = vpop.f32.mrf.mxu1 }
 0x278   :  { %v406_v2 = vpop.f32.mrf.mxu3 }
 0x279   :  { %v448_v3 = vadd.f32 %v447_v56, %v406_v2  ;;  %v449_v5 = vpop.f32.mrf.mxu0 }
 0x27b   :  { %v505_v4 = vadd.f32 %v500_v1, %v448_v3  ;;  %v502_v8 = vpop.f32.mrf.mxu1 }
 0x27d   :  { %v516_v9 = vmul.f32 %v505_v4, %v505_v4  ;;  %v507_v11 = vsel %vm189_vm1, %v505_v4, 0.0 }
 0x27f   :  { %v518_v15 = vsel %vm189_vm1, %v516_v9, 0.0 }
 0x280   :  { %v408_v6 = vpop.f32.mrf.mxu3 }
 0x281   :  { %v450_v7 = vadd.f32 %v449_v5, %v408_v6 }
 0x283   :  { %v506_v10 = vadd.f32 %v502_v8, %v450_v7 }
 0x285   :  { %v508_v12 = vsel %vm189_vm1, %v506_v10, 0.0  ;;  %v517_v13 = vmul.f32 %v506_v10, %v506_v10 }
 0x286   :  { %v509_v14 = vadd.f32 %v508_v12, %v507_v11 }
 0x287   :  { %v519_v16 = vsel %vm189_vm1, %v517_v13, 0.0 }
 0x288   :  { %v510_v17 = vrot.slane %v509_v14, 4  ;;  %v520_v18 = vadd.f32 %v519_v16, %v518_v15 }
 0x28a   :  { %v511_v19 = vadd.f32 %v510_v17, %v509_v14  ;;  %v521_v20 = vrot.slane %v520_v18, 4 }
 0x28c   :  { %v512_v21 = vrot.slane %v511_v19, 2  ;;  %v522_v22 = vadd.f32 %v521_v20, %v520_v18 }
 0x28e   :  { %v513_v23 = vadd.f32 %v512_v21, %v511_v19  ;;  %v523_v24 = vrot.slane %v522_v22, 2 }
 0x290   :  { %v514_v25 = vrot.slane %v513_v23, 1  ;;  %v524_v26 = vadd.f32 %v523_v24, %v522_v22 }
 0x292   :  { %v515_v27 = vadd.f32 %v514_v25, %v513_v23  ;;  %v525_v28 = vrot.slane %v524_v26, 1 }
 0x294   :  { %775 = vmatmul.msk.f32.vlgmr.msra.gmra.mxu2 %vm189_vm1, %v515_v27  ;;  %v526_v29 = vadd.f32 %v525_v28, %v524_v26 }
 0x296   :  { %776 = vmatmul.msk.f32.vlgmr.msra.gmra.mxu3 %vm189_vm1, %v526_v29 }
 0x317   :  { %v555_v30 = vpop.f32.mrf.mxu2 }
 0x318   :  { %v558_v31 = vmul.f32 0.0078125, %v555_v30 }
 0x319   :  { %v579_v32 = vpop.f32.mrf.mxu3 }
 0x31a   :  { %v583_v33 = vmul.f32 %v558_v31, %v558_v31  ;;  %v582_v34 = vmul.f32 0.0078125, %v579_v32 }
 0x31c   :  { %v584_v35 = vsub.f32 %v582_v34, %v583_v33 }
 0x31e   :  { %v585_v36 = vmax.f32 %v584_v35, 0.0 }
 0x320   :  { %v587_v37 = vadd.f32 1e-05, %v585_v36 }
 0x322   :  { %819 = vrsqrt.f32 %v587_v37  ;;  %vm594_vm7 = vweird.f32 %v587_v37 }
 0x328   :  { %v820_v46 = vpop.eup %819 }
 0x329   :  { %v589_v47 = vmul.f32 %v820_v46, %v587_v37  ;;  %vm595_vm6 = vweird.f32 %v820_v46 }
 0x32a   :  { %vm596_vm8 = vmor %vm594_vm7, %vm595_vm6 }
 0x32b   :  { %v590_v48 = vmul.f32 %v820_v46, %v589_v47 }
 0x32d   :  { %v591_v49 = vmul.f32 0.5, %v590_v48 }
 0x32f   :  { %v592_v50 = vsub.f32 1.5, %v591_v49 }
 0x331   :  { %v593_v53 = vmul.f32 %v820_v46, %v592_v50 }
 0x333   :  { %v597_v54 = vsel %vm596_vm8, %v820_v46, %v593_v53 }
 0x334   :  { %v598_v55 = vmul.f32 %v597_v54, %v586_v51 }
 0x336   :  { %v600_v38 = vmul.f32 %v598_v55, %v558_v31  ;;  %777 = vmatmul.msk.f32.vlgmr.msrb.gmra.mxu2 %vm286_vm5, %v598_v55 }
 0x338   :  { %v601_v58 = vsub.f32 %v599_v57, %v600_v38 }
 0x33a   :  { %778 = vmatmul.msk.f32.vlgmr.msrb.gmra.mxu0 %vm286_vm5, %v601_v58 }
 0x3b7   :  { %v646_v39 = vpop.f32.mrf.mxu0 }
 0x3b8   :  { %v652_v60 = vperm.slane %v646_v39, 0 }
 0x3b9   :  { %v623_v59 = vpop.f32.mrf.mxu2 }
 0x3ba   :  { %v649_v40 = vperm.slane %v623_v59, 0 }
 0x3bc   :  { %v650_v41 = vmul.f32 %v649_v40, %v505_v4  ;;  %v651_v42 = vmul.f32 %v649_v40, %v506_v10 }
 0x3be   :  { %v653_v43 = vadd.f32 %v652_v60, %v650_v41  ;;  %v654_v44 = vadd.f32 %v652_v60, %v651_v42 }
 0x3c0   :  { %v655_v61 = vmax.f32 %v653_v43, 0.0  ;;  %v656_v62 = vmax.f32 %v654_v44, 0.0 }
 0x3c2   :  { %657 = vst.msk [vmem:[%s1094_s9] sm:$0xff] %vm189_vm1, %v655_v61 }
 0x3c3   :  { %658 = vst.msk [vmem:[%s1094_s9 + $0x8] sm:$0xff] %vm189_vm1, %v656_v62 }

</bundles_post_ra>
